<compile_context>
chip_gen: v5e
topology: v5e:2x2
jax: 0.10.0
libtpu: 0.0.40
codegen_flags: <defaults>
</compile_context>

<pallas_src>
import jax
import jax.numpy as jnp
from jax.experimental import pallas as pl
from jax.experimental.pallas import tpu as pltpu

HIDDEN = 256


def _mish(x):
    # mish(x) = x * tanh(softplus(x)) = x * (1 - 2 / ((1 + e^x)^2 + 1))
    # Rational form: 1 exp + 1 approx reciprocal (both EUP) instead of
    # exp + log1p + tanh (3 transcendentals).
    # Limits: e^x -> inf => factor -> 1 => mish -> x ; e^x -> 0 => mish -> 0.
    # (x == -inf would give NaN; post-matmul activations here are finite.)
    e = jnp.exp(x)
    t = 1.0 + e
    return x * (1.0 - 2.0 * pl.reciprocal(t * t + 1.0, approx=True))


def _critic_kernel(state_ref, action_ref, w_ref, b_ref, q_ref):
    """One grid step == one Q-net.

    w_ref : (R, H) bf16   rows = [ W1_state | W1_action | pad | W2 | W3 ]
    b_ref : (5, H) f32    rows = [ b1 | b2 | b3 | W4^T | (b4, 0, ...) ]
    q_ref : (B, 1) f32
    """
    f32 = jnp.float32
    cdt = w_ref.dtype                       # matmul input dtype (bf16)
    S = state_ref.shape[1]
    A = action_ref.shape[1]
    R, H = w_ref.shape
    o2 = R - 2 * H                          # W2 row offset (16-row aligned)
    o3 = R - H                              # W3 row offset

    xs = state_ref[...].astype(cdt)
    xa = action_ref[...].astype(cdt)

    # Layer 1: x @ W1 + b1, with x kept as separate state/action row blocks
    # (avoids a JAX-side concatenate and its HBM round trip).
    h1 = (jnp.dot(xs, w_ref[0:S, :], preferred_element_type=f32)
          + jnp.dot(xa, w_ref[S:S + A, :], preferred_element_type=f32)
          + b_ref[0:1, :])
    h1 = _mish(h1)

    # Layers 2-3 (f32 accumulation, f32 elementwise math).
    h2 = _mish(jnp.dot(h1.astype(cdt), w_ref[o2:o2 + H, :],
                       preferred_element_type=f32) + b_ref[1:2, :])
    h3 = _mish(jnp.dot(h2.astype(cdt), w_ref[o3:o3 + H, :],
                       preferred_element_type=f32) + b_ref[2:3, :])

    # Head: q = h3 @ W4 + b4.  W4 is stored (f32) as a row of the bias slab,
    # so the head is an elementwise mul + lane reduction -> no extra DMA.
    w4_row = b_ref[3:4, :]                  # (1, H) f32
    b4 = b_ref[4:5, 0:1]                    # (1, 1) f32
    q = jnp.sum(h3 * w4_row, axis=-1, keepdims=True) + b4
    q_ref[...] = jnp.clip(q, 0.0, 1.0).astype(q_ref.dtype)


def init_critic_params(key, state_dim, act_dim, hidden=HIDDEN):
    """PyTorch-style (uniform +-1/sqrt(fan_in)) init, f32 master copy.
    Returns flat tuple (w1,b1,...,w4,b4) for q1 then q2; weights are [in, out]."""
    in_dim = state_dim + act_dim
    dims = [(in_dim, hidden), (hidden, hidden), (hidden, hidden), (hidden, 1)]
    params = []
    for _net in range(2):
        for (fan_in, fan_out) in dims:
            key, kw, kb = jax.random.split(key, 3)
            bound = 1.0 / jnp.sqrt(fan_in)
            w = jax.random.uniform(kw, (fan_in, fan_out), jnp.float32, -bound, bound)
            b = jax.random.uniform(kb, (1, fan_out), jnp.float32, -bound, bound)
            params += [w, b]
    return tuple(params)


def pack_params(params, state_dim, act_dim, weight_dtype=jnp.bfloat16):
    """Pack the 16 per-net f32 params into two slabs:
       weights (2, R, H) bf16  and  biases+head (2, 5, H) f32."""
    (w1a, b1a, w2a, b2a, w3a, b3a, w4a, b4a,
     w1b, b1b, w2b, b2b, w3b, b3b, w4b, b4b) = params
    hidden = w2a.shape[0]
    d = state_dim + act_dim
    o2 = ((d + 15) // 16) * 16          # bf16 sublane-tile aligned W2 offset
    rows = o2 + 2 * hidden

    def one_net(w1, b1, w2, b2, w3, b3, w4, b4):
        w = jnp.zeros((rows, hidden), jnp.float32)
        w = w.at[0:d, :].set(w1)
        w = w.at[o2:o2 + hidden, :].set(w2)
        w = w.at[o2 + hidden:rows, :].set(w3)
        b = jnp.zeros((5, hidden), jnp.float32)
        b = b.at[0, :].set(b1[0])
        b = b.at[1, :].set(b2[0])
        b = b.at[2, :].set(b3[0])
        b = b.at[3, :].set(w4[:, 0])        # head weight, kept f32
        b = b.at[4, 0].set(b4[0, 0])        # head bias
        return w.astype(weight_dtype), b

    wa, ba = one_net(w1a, b1a, w2a, b2a, w3a, b3a, w4a, b4a)
    wb, bb = one_net(w1b, b1b, w2b, b2b, w3b, b3b, w4b, b4b)
    return jnp.stack([wa, wb]), jnp.stack([ba, bb])


@jax.jit
def critic_forward(state, action, packed):
    w_slab, b_slab = packed
    B, S = state.shape
    A = action.shape[1]
    _, R, H = w_slab.shape
    nb = b_slab.shape[1]

    q = pl.pallas_call(
        _critic_kernel,
        out_shape=jax.ShapeDtypeStruct((2, B, 1), jnp.float32),
        grid=(2,),
        in_specs=[
            pl.BlockSpec((B, S), lambda n: (0, 0)),            # state: fetched once
            pl.BlockSpec((B, A), lambda n: (0, 0)),            # action: fetched once
            pl.BlockSpec((None, R, H), lambda n: (n, 0, 0)),   # per-net weight slab
            pl.BlockSpec((None, nb, H), lambda n: (n, 0, 0)),  # per-net bias/head slab
        ],
        out_specs=pl.BlockSpec((None, B, 1), lambda n: (n, 0, 0)),
        compiler_params=pltpu.CompilerParams(
            # Keep both nets sequential on one TensorCore (2-TC split is pure
            # overhead at B=8); the pipeline still prefetches net 1's weights
            # while net 0 computes.
            dimension_semantics=("arbitrary",)),
    )(state.astype(jnp.float32), action.astype(jnp.float32), w_slab, b_slab)
    return q[0], q[1]


def critic_reference(state, action, params):
    """Pure-JAX f32 reference matching the PyTorch module semantics."""
    x = jnp.concatenate([state, action], axis=-1).astype(jnp.float32)

    def mlp(p):
        w1, b1, w2, b2, w3, b3, w4, b4 = p
        h = x
        for w, b in ((w1, b1), (w2, b2), (w3, b3)):
            h = h @ w + b
            h = h * jnp.tanh(jax.nn.softplus(h))
        return h @ w4 + b4

    q1 = jnp.clip(mlp(params[:8]), 0.0, 1.0)
    q2 = jnp.clip(mlp(params[8:]), 0.0, 1.0)
    return q1, q2


def quantize_weights(params):
    """Round W1/W2/W3 (the bf16-shipped weights) through bf16 to mimic the
    kernel's weight dtype; biases and the f32-shipped head weight stay exact."""
    out = []
    for p in params:
        if p.ndim == 2 and p.shape[0] > 1 and p.shape[1] > 1:   # W1/W2/W3
            out.append(p.astype(jnp.bfloat16).astype(jnp.float32))
        else:                                                   # biases, W4
            out.append(p)
    return tuple(out)


if __name__ == "__main__":
    # Small shapes implied by the module: batch=8, state_dim=16, act_dim=8.
    B, STATE_DIM, ACT_DIM = 8, 16, 8

    key = jax.random.PRNGKey(0)
    k_state, k_action, k_params = jax.random.split(key, 3)

    state = jax.random.normal(k_state, (B, STATE_DIM), jnp.float32)
    action = jax.random.normal(k_action, (B, ACT_DIM), jnp.float32)
    params = init_critic_params(k_params, STATE_DIM, ACT_DIM)
    packed = pack_params(params, STATE_DIM, ACT_DIM)

    q1, q2 = critic_forward(state, action, packed)
    jax.block_until_ready((q1, q2))
    assert q1.shape == (B, 1) and q2.shape == (B, 1)

    # Tight check vs. a reference using the same bf16-quantized weights
    # (isolates kernel numerics: bf16 activations + rational Mish w/ approx recip).
    q1_qref, q2_qref = critic_reference(state, action, quantize_weights(params))
    assert jnp.allclose(q1, q1_qref, atol=2e-2), "q1 mismatch vs bf16-weight reference"
    assert jnp.allclose(q2, q2_qref, atol=2e-2), "q2 mismatch vs bf16-weight reference"

    # Looser check vs. the exact f32 PyTorch-semantics reference
    # (tolerance relaxed only because W1/W2/W3 are shipped in bf16).
    q1_ref, q2_ref = critic_reference(state, action, params)
    assert jnp.allclose(q1, q1_ref, atol=4e-2), "q1 mismatch vs f32 reference"
    assert jnp.allclose(q2, q2_ref, atol=4e-2), "q2 mismatch vs f32 reference"

    print("KERNEL_OK")
</pallas_src>

<mosaic_0001>
module attributes {stable_mosaic.version = 11 : i64} {
  func.func @_critic_kernel(%arg0: i32, %arg1: memref<8x16xf32, #tpu.memory_space<vmem>>, %arg2: memref<8x8xf32, #tpu.memory_space<vmem>>, %arg3: memref<1x544x256xbf16, #tpu.memory_space<vmem>>, %arg4: memref<1x5x256xf32, #tpu.memory_space<vmem>>, %arg5: memref<1x8x1xf32, #tpu.memory_space<vmem>>) attributes {dimension_semantics = [#tpu.dimension_semantics<arbitrary>], iteration_bounds = array<i64: 2>, scalar_prefetch = 0 : i64, scratch_operands = 0 : i64, tpu.core_type = #tpu.core_type<tc>, window_params = [{pipeline_mode = #tpu.pipeline_mode<synchronous>, transform_indices = @transform_0, window_bounds = array<i64: 8, 16>}, {pipeline_mode = #tpu.pipeline_mode<synchronous>, transform_indices = @transform_1, window_bounds = array<i64: 8, 8>}, {transform_indices = @transform_2, window_bounds = array<i64: 1, 544, 256>}, {transform_indices = @transform_3, window_bounds = array<i64: 1, 5, 256>}, {transform_indices = @transform_4, window_bounds = array<i64: 1, 8, 1>}]} {
    %c0 = arith.constant 0 : index
    %c0_0 = arith.constant 0 : index
    %0 = vector.load %arg1[%c0, %c0_0] : memref<8x16xf32, #tpu.memory_space<vmem>>, vector<8x16xf32>
    %1 = arith.truncf %0 : vector<8x16xf32> to vector<8x16xbf16>
    %c0_1 = arith.constant 0 : index
    %c0_2 = arith.constant 0 : index
    %2 = vector.load %arg2[%c0_1, %c0_2] : memref<8x8xf32, #tpu.memory_space<vmem>>, vector<8x8xf32>
    %3 = arith.truncf %2 : vector<8x8xf32> to vector<8x8xbf16>
    %c0_3 = arith.constant 0 : index
    %c0_4 = arith.constant 0 : index
    %c0_5 = arith.constant 0 : index
    %4 = vector.load %arg3[%c0_3, %c0_4, %c0_5] : memref<1x544x256xbf16, #tpu.memory_space<vmem>>, vector<1x16x256xbf16>
    %5 = vector.shape_cast %4 : vector<1x16x256xbf16> to vector<16x256xbf16>
    %cst = arith.constant dense<0.000000e+00> : vector<8x256xf32>
    %6 = tpu.matmul %1, %5, %cst {dimension_numbers = #tpu.dot_dimension_numbers<[1], [0], [0], [1], [0, 0, 1, 1], [], []>} : vector<8x16xbf16>, vector<16x256xbf16>, vector<8x256xf32> -> vector<8x256xf32>
    %c0_6 = arith.constant 0 : index
    %c16 = arith.constant 16 : index
    %c0_7 = arith.constant 0 : index
    %7 = vector.load %arg3[%c0_6, %c16, %c0_7] : memref<1x544x256xbf16, #tpu.memory_space<vmem>>, vector<1x8x256xbf16>
    %8 = vector.shape_cast %7 : vector<1x8x256xbf16> to vector<8x256xbf16>
    %cst_8 = arith.constant dense<0.000000e+00> : vector<8x256xf32>
    %9 = tpu.matmul %3, %8, %cst_8 {dimension_numbers = #tpu.dot_dimension_numbers<[1], [0], [0], [1], [0, 0, 1, 1], [], []>} : vector<8x8xbf16>, vector<8x256xbf16>, vector<8x256xf32> -> vector<8x256xf32>
    %10 = arith.addf %6, %9 : vector<8x256xf32>
    %c0_9 = arith.constant 0 : index
    %c0_10 = arith.constant 0 : index
    %c0_11 = arith.constant 0 : index
    %11 = vector.load %arg4[%c0_9, %c0_10, %c0_11] : memref<1x5x256xf32, #tpu.memory_space<vmem>>, vector<1x1x256xf32>
    %12 = vector.shape_cast %11 : vector<1x1x256xf32> to vector<1x256xf32>
    %13 = vector.broadcast %12 : vector<1x256xf32> to vector<8x256xf32>
    %14 = arith.addf %10, %13 : vector<8x256xf32>
    %15 = math.exp %14 : vector<8x256xf32>
    %cst_12 = arith.constant 1.000000e+00 : f32
    %16 = vector.broadcast %cst_12 : f32 to vector<8x256xf32>
    %17 = arith.addf %16, %15 : vector<8x256xf32>
    %18 = arith.mulf %17, %17 : vector<8x256xf32>
    %cst_13 = arith.constant 1.000000e+00 : f32
    %19 = vector.broadcast %cst_13 : f32 to vector<8x256xf32>
    %20 = arith.addf %18, %19 : vector<8x256xf32>
    %21 = tpu.reciprocal %20 {approx = true} : vector<8x256xf32> -> vector<8x256xf32>
    %cst_14 = arith.constant 2.000000e+00 : f32
    %22 = vector.broadcast %cst_14 : f32 to vector<8x256xf32>
    %23 = arith.mulf %22, %21 : vector<8x256xf32>
    %cst_15 = arith.constant 1.000000e+00 : f32
    %24 = vector.broadcast %cst_15 : f32 to vector<8x256xf32>
    %25 = arith.subf %24, %23 : vector<8x256xf32>
    %26 = arith.mulf %14, %25 : vector<8x256xf32>
    %27 = arith.truncf %26 : vector<8x256xf32> to vector<8x256xbf16>
    %c0_16 = arith.constant 0 : index
    %c32 = arith.constant 32 : index
    %c0_17 = arith.constant 0 : index
    %28 = vector.load %arg3[%c0_16, %c32, %c0_17] : memref<1x544x256xbf16, #tpu.memory_space<vmem>>, vector<1x256x256xbf16>
    %29 = vector.shape_cast %28 : vector<1x256x256xbf16> to vector<256x256xbf16>
    %cst_18 = arith.constant dense<0.000000e+00> : vector<8x256xf32>
    %30 = tpu.matmul %27, %29, %cst_18 {dimension_numbers = #tpu.dot_dimension_numbers<[1], [0], [0], [1], [0, 0, 1, 1], [], []>} : vector<8x256xbf16>, vector<256x256xbf16>, vector<8x256xf32> -> vector<8x256xf32>
    %c0_19 = arith.constant 0 : index
    %c1 = arith.constant 1 : index
    %c0_20 = arith.constant 0 : index
    %31 = vector.load %arg4[%c0_19, %c1, %c0_20] : memref<1x5x256xf32, #tpu.memory_space<vmem>>, vector<1x1x256xf32>
    %32 = vector.shape_cast %31 : vector<1x1x256xf32> to vector<1x256xf32>
    %33 = vector.broadcast %32 : vector<1x256xf32> to vector<8x256xf32>
    %34 = arith.addf %30, %33 : vector<8x256xf32>
    %35 = math.exp %34 : vector<8x256xf32>
    %cst_21 = arith.constant 1.000000e+00 : f32
    %36 = vector.broadcast %cst_21 : f32 to vector<8x256xf32>
    %37 = arith.addf %36, %35 : vector<8x256xf32>
    %38 = arith.mulf %37, %37 : vector<8x256xf32>
    %cst_22 = arith.constant 1.000000e+00 : f32
    %39 = vector.broadcast %cst_22 : f32 to vector<8x256xf32>
    %40 = arith.addf %38, %39 : vector<8x256xf32>
    %41 = tpu.reciprocal %40 {approx = true} : vector<8x256xf32> -> vector<8x256xf32>
    %cst_23 = arith.constant 2.000000e+00 : f32
    %42 = vector.broadcast %cst_23 : f32 to vector<8x256xf32>
    %43 = arith.mulf %42, %41 : vector<8x256xf32>
    %cst_24 = arith.constant 1.000000e+00 : f32
    %44 = vector.broadcast %cst_24 : f32 to vector<8x256xf32>
    %45 = arith.subf %44, %43 : vector<8x256xf32>
    %46 = arith.mulf %34, %45 : vector<8x256xf32>
    %47 = arith.truncf %46 : vector<8x256xf32> to vector<8x256xbf16>
    %c0_25 = arith.constant 0 : index
    %c288 = arith.constant 288 : index
    %c0_26 = arith.constant 0 : index
    %48 = vector.load %arg3[%c0_25, %c288, %c0_26] : memref<1x544x256xbf16, #tpu.memory_space<vmem>>, vector<1x256x256xbf16>
    %49 = vector.shape_cast %48 : vector<1x256x256xbf16> to vector<256x256xbf16>
    %cst_27 = arith.constant dense<0.000000e+00> : vector<8x256xf32>
    %50 = tpu.matmul %47, %49, %cst_27 {dimension_numbers = #tpu.dot_dimension_numbers<[1], [0], [0], [1], [0, 0, 1, 1], [], []>} : vector<8x256xbf16>, vector<256x256xbf16>, vector<8x256xf32> -> vector<8x256xf32>
    %c0_28 = arith.constant 0 : index
    %c2 = arith.constant 2 : index
    %c0_29 = arith.constant 0 : index
    %51 = vector.load %arg4[%c0_28, %c2, %c0_29] : memref<1x5x256xf32, #tpu.memory_space<vmem>>, vector<1x1x256xf32>
    %52 = vector.shape_cast %51 : vector<1x1x256xf32> to vector<1x256xf32>
    %53 = vector.broadcast %52 : vector<1x256xf32> to vector<8x256xf32>
    %54 = arith.addf %50, %53 : vector<8x256xf32>
    %55 = math.exp %54 : vector<8x256xf32>
    %cst_30 = arith.constant 1.000000e+00 : f32
    %56 = vector.broadcast %cst_30 : f32 to vector<8x256xf32>
    %57 = arith.addf %56, %55 : vector<8x256xf32>
    %58 = arith.mulf %57, %57 : vector<8x256xf32>
    %cst_31 = arith.constant 1.000000e+00 : f32
    %59 = vector.broadcast %cst_31 : f32 to vector<8x256xf32>
    %60 = arith.addf %58, %59 : vector<8x256xf32>
    %61 = tpu.reciprocal %60 {approx = true} : vector<8x256xf32> -> vector<8x256xf32>
    %cst_32 = arith.constant 2.000000e+00 : f32
    %62 = vector.broadcast %cst_32 : f32 to vector<8x256xf32>
    %63 = arith.mulf %62, %61 : vector<8x256xf32>
    %cst_33 = arith.constant 1.000000e+00 : f32
    %64 = vector.broadcast %cst_33 : f32 to vector<8x256xf32>
    %65 = arith.subf %64, %63 : vector<8x256xf32>
    %66 = arith.mulf %54, %65 : vector<8x256xf32>
    %c0_34 = arith.constant 0 : index
    %c3 = arith.constant 3 : index
    %c0_35 = arith.constant 0 : index
    %67 = vector.load %arg4[%c0_34, %c3, %c0_35] : memref<1x5x256xf32, #tpu.memory_space<vmem>>, vector<1x1x256xf32>
    %68 = vector.shape_cast %67 : vector<1x1x256xf32> to vector<1x256xf32>
    %c0_36 = arith.constant 0 : index
    %c4 = arith.constant 4 : index
    %c0_37 = arith.constant 0 : index
    %69 = vector.load %arg4[%c0_36, %c4, %c0_37] : memref<1x5x256xf32, #tpu.memory_space<vmem>>, vector<1x1x1xf32>
    %70 = vector.shape_cast %69 : vector<1x1x1xf32> to vector<1x1xf32>
    %71 = vector.broadcast %68 : vector<1x256xf32> to vector<8x256xf32>
    %72 = arith.mulf %66, %71 : vector<8x256xf32>
    %cst_38 = arith.constant dense<0.000000e+00> : vector<8xf32>
    %73 = vector.multi_reduction <add>, %72, %cst_38 [1] : vector<8x256xf32> to vector<8xf32>
    %74 = vector.shape_cast %73 : vector<8xf32> to vector<8x1xf32>
    %75 = vector.broadcast %70 : vector<1x1xf32> to vector<8x1xf32>
    %76 = arith.addf %74, %75 : vector<8x1xf32>
    %cst_39 = arith.constant 0.000000e+00 : f32
    %cst_40 = arith.constant 1.000000e+00 : f32
    %77 = vector.broadcast %cst_39 : f32 to vector<8x1xf32>
    %78 = arith.maximumf %77, %76 : vector<8x1xf32>
    %79 = vector.broadcast %cst_40 : f32 to vector<8x1xf32>
    %80 = arith.minimumf %79, %78 : vector<8x1xf32>
    %c0_41 = arith.constant 0 : index
    %c0_42 = arith.constant 0 : index
    %c0_43 = arith.constant 0 : index
    %81 = vector.load %arg5[%c0_41, %c0_42, %c0_43] : memref<1x8x1xf32, #tpu.memory_space<vmem>>, vector<1x8x1xf32>
    %82 = vector.shape_cast %81 : vector<1x8x1xf32> to vector<8x1xf32>
    %83 = vector.shape_cast %80 : vector<8x1xf32> to vector<1x8x1xf32>
    tpu.vector_store %arg5[%c0_41, %c0_42, %c0_43], %83 {strides = array<i32>} : memref<1x8x1xf32, #tpu.memory_space<vmem>>, vector<1x8x1xf32>,
    return
  }
  func.func @transform_0(%arg0: i32) -> (i32, i32) {
    %c0_i32 = arith.constant 0 : i32
    %c0_i32_0 = arith.constant 0 : i32
    %c0_i32_1 = arith.constant 0 : i32
    return %c0_i32, %c0_i32_0 : i32, i32
  }
  func.func @transform_1(%arg0: i32) -> (i32, i32) {
    %c0_i32 = arith.constant 0 : i32
    %c0_i32_0 = arith.constant 0 : i32
    %c0_i32_1 = arith.constant 0 : i32
    return %c0_i32, %c0_i32_0 : i32, i32
  }
  func.func @transform_2(%arg0: i32) -> (i32, i32, i32) {
    %c0_i32 = arith.constant 0 : i32
    %c0_i32_0 = arith.constant 0 : i32
    %c0_i32_1 = arith.constant 0 : i32
    return %arg0, %c0_i32, %c0_i32_0 : i32, i32, i32
  }
  func.func @transform_3(%arg0: i32) -> (i32, i32, i32) {
    %c0_i32 = arith.constant 0 : i32
    %c0_i32_0 = arith.constant 0 : i32
    %c0_i32_1 = arith.constant 0 : i32
    return %arg0, %c0_i32, %c0_i32_0 : i32, i32, i32
  }
  func.func @transform_4(%arg0: i32) -> (i32, i32, i32) {
    %c0_i32 = arith.constant 0 : i32
    %c0_i32_0 = arith.constant 0 : i32
    %c0_i32_1 = arith.constant 0 : i32
    return %arg0, %c0_i32, %c0_i32_0 : i32, i32, i32
  }
}

</mosaic_0001>

<bundles_post_ra>
// kernel: critic_forward.1
= control target key start
LH: loop header
LB: loop body
LE: loop exit
PB: predicated region body
PF: predicated region fallthrough
CT: control target
= control target key end

     0   :  { %9 = vsyncpa [#allocation3], 0  ;;  %s1747_s0 = inlined_call_operand.vmem [shape: f32[8,16], index: 0, kind: input, shape index: {}]   ;;  %s1748_s1 = inlined_call_operand.vmem [shape: f32[8,8], index: 1, kind: input, shape index: {}]   ;;  %s1749_s2 = inlined_call_operand.hbm [shape: bf16[2,544,256], index: 2, kind: input, shape index: {}]   ;;  %s1750_s3 = inlined_call_operand.vmem [shape: f32[2,5,256], index: 3, kind: input, shape index: {}]   ;;  %s1751_s4 = inlined_call_operand.vmem [shape: f32[2,8,1], index: 4, kind: output, shape index: {}]  }
   0x1   :  { %11 = vsyncpa [#allocation3 + $0x1], 0  ;;  %s1500_s15 = smov 0   ;;  %s1502_s16 = smov 0  }
   0x2   :  { %s1504_s17 = smov 0   ;;  %s1506_s18 = smov 0  }
   0x3 LB: > { %s1519_s19 = sadd.s32 4294967295, %s1471_s18   ;;  %s1522_s20 = sadd.s32 1, %s1471_s18   ;;  %s1471_s18 = sphi %s1506_s18, %s1757_s18   ;;  %s1467_s17 = sphi %s1504_s17, %s1756_s17   ;;  %s1463_s16 = sphi %s1502_s16, %s1755_s16   ;;  %s1459_s15 = sphi %s1500_s15, %s1754_s15  }
   0x4   : > { %s63_s21 = ssub.s32 %s1471_s18, %s1522_s20  ;;  %s66_s22 = sadd.s32 1, %s1467_s17 }
   0x5   : > { %p64_p0 = scmp.eq.s32.totalorder %s63_s21, 0  ;;  %p73_p1 = scmp.ne.s32.totalorder %s1467_s17, %s1463_s16 }
   0x6   : > { %p74_p2 = scmp.eq.s32.totalorder %s1471_s18, 0  ;;  %p79_p3 = scmp.ne.s32.totalorder %s1463_s16, %s1459_s15 }
   0x7   : > { %s1532_s23 = scalar_select %p64_p0, %s1467_s17, %s66_s22  }
   0x8   : > { %p75_p4 = por %p74_p2, %p73_p1  ;;  %p80_p5 = scmp.eq.s32.totalorder %s1519_s19, 0 }
   0x9   : > { %p1348_p6 = scmp.lt.s32.totalorder %s1471_s18, 2  ;;  %s161_s25 = sand.u32 1, %s1467_s17  }
   0xa   : > { %p1536_p7 = por %p80_p5, %p79_p3  ;;  %s1339_s26 = smul.u32 544, %s161_s25 }
   0xb   : > { %s1340_s27 = smul.u32 544, %s1471_s18  ;;  %p1542_p8 = pnand %p1348_p6, %p75_p4 }
   0xc   : > { %s165_s6 = scalar_lea.vmem [#allocation2], %s1339_s26  ;;  %p995_p9 = scmp.ge.s32.totalorder %s1471_s18, 1 }
   0xd   : > { %s170_s5 = scalar_lea.hbm %s1749_s2, %s1340_s27  ;;  %s173_s7 = sshll.u32 %s165_s6, 4  ;;  %s174_s7 = int_to_ptr.vmem [resolvable:$true] %s173_s7 }
   0xe   : > { %s171_s8 = sshll.u32 %s170_s5, 4  ;;  %s162_s9 = scalar_lea.sflag [#allocation3], %s161_s25  ;;  %s172_s8 = int_to_ptr.hbm [resolvable:$true] %s171_s8 }
   0xf   : > { %s1407_s10 = sshra.s32 %s172_s8, 4  ;;  %p1411_p11 = pneg %p1542_p8  ;;  %s1408_s10 = int_to_ptr.hbm [resolvable:$true] %s1407_s10 }
  0x10   : > { %s1409_s11 = scalar_lea.hbm %s1408_s10, 544  ;;  %s1414_s14 = scalar_lea.hbm %s1749_s2, 1088 }
  0x11   : > { %p1410_p10 = scmp.ne.s32.totalorder %s1408_s10, %s1409_s11  ;;  %p1415_p0 = scmp.lt.s32.totalorder %s1408_s10, %s1749_s2 }
  0x12   : > { %p1416_p1 = scmp.lt.s32.totalorder %s1414_s14, %s1409_s11 }
  0x13   : > { %p1412_p12 = pnand %p1411_p11, %p1410_p10 }
  0x14   : > { %p1417_p2 = por %p1416_p1, %p1415_p0 }
  0x15   : > { %p1413_p13 = pneg %p1412_p12 }
  0x17   : > { %p1418_p3 = pnand %p1417_p2, %p1413_p13 }
  0x19   : > { %1421 = shalt.err (!%p1418_p3)
}
  0x1a   : > { %s1473_s22 = smov 128   ;;  %s1474_s25 = smov 8  }
  0x1b   : > { %1347 = dma.hbm_to_vmem [thread:$0]  (!%p1542_p8), %s172_s8, 8704, %s174_s7, %s162_s9, %s1473_s22, %s1473_s22, %s1474_s25  }
  0x1c   : > { %p189_p4 = scmp.lt.s32.totalorder %s1471_s18, 3 }
  0x1e   : > { %p190_p5 = pnand %p995_p9, %p189_p4 }
  0x1f   : > { %s195_s26 = sand.u32 (!%p190_p5), 1, %s1463_s16  }
  0x20   : > { %193 = sbr.rel (%p190_p5) target bundleno = 665 (0x299), region = 36  ;;  %s196_s29 = scalar_lea.sflag (!%p190_p5), [#allocation3], %s195_s26 }
  0x21   : > { %s1341_s27 = smul.u32 (!%p190_p5), 544, %s195_s26 }
  0x23   : > { %s1564_s30 = scalar_lea.vmem (!%p190_p5), [#allocation2], %s1341_s27 }
  0x25   : > { %1454 = dma.done.wait (%p1536_p7), %s196_s29, 8704  }
  0x26   : > { %1456 = vsyncadd (%p1536_p7), %s196_s29, 4294958592  ;;  %v1003_v0 = vld [vmem:[%s1564_s30] sm:$0xf]  ;;  %v1274_v1 = vld [vmem:[%s1564_s30 + $0x4] sm:$0xf0]  ;;  %vm255_vm0 = vcmask 1043456  }
  0x27   : > { %v1273_v2 = vld [vmem:[%s1564_s30 + $0x4] sm:$0xf]  ;;  %v1004_v3 = vor.u32 %v1274_v1, %v1003_v0  ;;  %v1005_v4 = vld [vmem:[%s1564_s30 + $0x8] sm:$0xf0]  ;;  %v245_v5 = vld [vmem:[%s1564_s30 + $0x10] sm:$0xff]  ;;  %vm298_vm1 = vcmask 130048  }
  0x28   : > { %v239_v6 = vld [vmem:[%s1747_s0] sm:$0xff]  ;;  %v1008_v7 = vor.u32 %v1273_v2, %v1005_v4  ;;  %v247_v8 = vunpack.c.l.b16 %v245_v5  ;;  %v248_v9 = vunpack.c.h.b16 %v245_v5  ;;  %vm251_vm2 = vcmask 64512   ;;  %v1070_v17 = vld [vmem:[%s1564_s30 + $0x90] sm:$0xf]  ;;  %v1290_v18 = vld [vmem:[%s1564_s30 + $0x94] sm:$0xf0] }
  0x29   : > { %v240_v10 = vpack.c.bf16 %v239_v6, %v239_v6  ;;  %309 = vmatpush.bf16.msra.mxu2 %v1004_v3  ;;  %v241_v11 = vld [vmem:[%s1748_s1] sm:$0xff]  ;;  %v1071_v19 = vor.u32 %v1290_v18, %v1070_v17  ;;  %v1134_v20 = vld [vmem:[%s1564_s30 + $0x110] sm:$0xf]  ;;  %v1306_v21 = vld [vmem:[%s1564_s30 + $0x114] sm:$0xf0]  ;;  %p229_p6 = scmp.lt.s32.totalorder %s1519_s19, 1 }
  0x2a   : > { %322 = vmatpush.bf16.msra.mxu3 %v1008_v7  ;;  %v249_v12 = vpack.c.b16 %v247_v8, %v247_v8  ;;  %v250_v13 = vpack.c.b16 %v248_v9, %v248_v9  ;;  %v242_v16 = vpack.c.bf16 %v241_v11, %v241_v11  ;;  %v1289_v22 = vld [vmem:[%s1564_s30 + $0x94] sm:$0xf]  ;;  %v1135_v23 = vor.u32 %v1306_v21, %v1134_v20  ;;  %v1072_v24 = vld [vmem:[%s1564_s30 + $0x98] sm:$0xf0]  ;;  %v1062_v29 = vld [vmem:[%s1564_s30 + $0x80] sm:$0xf] }
  0x2b   : > { %v1305_v25 = vld [vmem:[%s1564_s30 + $0x114] sm:$0xf]  ;;  %v1136_v26 = vld [vmem:[%s1564_s30 + $0x118] sm:$0xf0]  ;;  %v1075_v27 = vor.u32 %v1289_v22, %v1072_v24  ;;  %v1288_v30 = vld [vmem:[%s1564_s30 + $0x84] sm:$0xf0] }
  0x2c   : > { %v257_v14 = vsel %vm255_vm0, %v249_v12, 0  ;;  %v260_v15 = vsel %vm255_vm0, %v250_v13, 0  ;;  %1009 = vmatmul.msk.bf16.vlgmr.msra.gmra.mxu2 %vm298_vm1, %v240_v10  ;;  %v1139_v28 = vor.u32 %v1305_v25, %v1136_v26  ;;  %v1126_v31 = vld [vmem:[%s1564_s30 + $0x100] sm:$0xf]  ;;  %v1063_v32 = vor.u32 %v1288_v30, %v1062_v29  ;;  %v1304_v33 = vld [vmem:[%s1564_s30 + $0x104] sm:$0xf0] }
  0x2d   : > { %269 = vmatpush.bf16.msra.mxu0 %v257_v14  ;;  %282 = vmatpush.bf16.msra.mxu1 %v260_v15  ;;  %v1287_v34 = vld [vmem:[%s1564_s30 + $0x84] sm:$0xf]  ;;  %v1064_v35 = vld [vmem:[%s1564_s30 + $0x88] sm:$0xf0]  ;;  %v1127_v36 = vor.u32 %v1304_v33, %v1126_v31  ;;  %v1054_v41 = vld [vmem:[%s1564_s30 + $0x70] sm:$0xf] }
  0x2e   : > { %1010 = vmatmul.msk.bf16.vlgmr.msra.gmra.mxu3 %vm298_vm1, %v240_v10  ;;  %581 = vmatpush.bf16.msrb.mxu2 %v1075_v27  ;;  %v1067_v37 = vor.u32 %v1287_v34, %v1064_v35  ;;  %v1303_v38 = vld [vmem:[%s1564_s30 + $0x104] sm:$0xf]  ;;  %v1128_v39 = vld [vmem:[%s1564_s30 + $0x108] sm:$0xf0]  ;;  %v1286_v42 = vld [vmem:[%s1564_s30 + $0x74] sm:$0xf0] }
  0x2f   : > { %594 = vmatpush.bf16.msrb.mxu3 %v1139_v28  ;;  %v1131_v40 = vor.u32 %v1303_v38, %v1128_v39  ;;  %v1118_v43 = vld [vmem:[%s1564_s30 + $0xf0] sm:$0xf]  ;;  %v1055_v44 = vor.u32 %v1286_v42, %v1054_v41  ;;  %v1302_v45 = vld [vmem:[%s1564_s30 + $0xf4] sm:$0xf0]  ;;  %v1285_v46 = vld [vmem:[%s1564_s30 + $0x74] sm:$0xf] }
  0x30   : > { %999 = vmatmul.msk.bf16.vlgmr.msra.gmra.mxu0 %vm251_vm2, %v242_v16  ;;  %1000 = vmatmul.msk.bf16.vlgmr.msra.gmra.mxu1 %vm251_vm2, %v242_v16  ;;  %v1056_v47 = vld [vmem:[%s1564_s30 + $0x78] sm:$0xf0]  ;;  %v1119_v48 = vor.u32 %v1302_v45, %v1118_v43  ;;  %v1301_v50 = vld [vmem:[%s1564_s30 + $0xf4] sm:$0xf]  ;;  %s1759_s19 = smov (!%p229_p6, %s1519_s19), 1  ;;  %vm912_vm3 = vcmask 7168  }
  0x31   : > { %555 = vmatpush.bf16.msrb.mxu0 %v1071_v19  ;;  %568 = vmatpush.bf16.msrb.mxu1 %v1135_v23  ;;  %v1059_v49 = vor.u32 %v1285_v46, %v1056_v47  ;;  %v1120_v51 = vld [vmem:[%s1564_s30 + $0xf8] sm:$0xf0]  ;;  %v1046_v53 = vld [vmem:[%s1564_s30 + $0x60] sm:$0xf]  ;;  %v1284_v54 = vld [vmem:[%s1564_s30 + $0x64] sm:$0xf0] }
  0x32   : > { %582 = vmatpush.bf16.msrb.mxu2 %v1067_v37  ;;  %v1123_v52 = vor.u32 %v1301_v50, %v1120_v51  ;;  %v1110_v55 = vld [vmem:[%s1564_s30 + $0xe0] sm:$0xf]  ;;  %v1047_v56 = vor.u32 %v1284_v54, %v1046_v53  ;;  %v1300_v57 = vld [vmem:[%s1564_s30 + $0xe4] sm:$0xf0]  ;;  %v1283_v58 = vld [vmem:[%s1564_s30 + $0x64] sm:$0xf] }
  0x33   : > { %595 = vmatpush.bf16.msrb.mxu3 %v1131_v40  ;;  %v1048_v59 = vld [vmem:[%s1564_s30 + $0x68] sm:$0xf0]  ;;  %v1111_v60 = vor.u32 %v1300_v57, %v1110_v55  ;;  %v1299_v62 = vld [vmem:[%s1564_s30 + $0xe4] sm:$0xf]  ;;  %s1272_s6 = sshll.u32 %s1759_s19, 4  ;;  %s998_s10 = sshll.u32 %s1759_s19, 3 }
  0x34   : > { %v1051_v61 = vor.u32 %v1283_v58, %v1048_v59  ;;  %v1112_v63 = vld [vmem:[%s1564_s30 + $0xe8] sm:$0xf0]  ;;  %v1038_v1 = vld [vmem:[%s1564_s30 + $0x50] sm:$0xf]  ;;  %v1282_v2 = vld [vmem:[%s1564_s30 + $0x54] sm:$0xf0]  ;;  %s1634_s9 = scalar_lea.vmem %s1750_s3, %s1272_s6  ;;  %s237_s13 = scalar_lea.vmem %s1751_s4, %s998_s10 }
  0x35   : > { %556 = vmatpush.bf16.msrb.mxu0 %v1063_v32  ;;  %569 = vmatpush.bf16.msrb.mxu1 %v1127_v36  ;;  %v1115_v0 = vor.u32 %v1299_v62, %v1112_v63  ;;  %v1102_v3 = vld [vmem:[%s1564_s30 + $0xd0] sm:$0xf]  ;;  %v1039_v4 = vor.u32 %v1282_v2, %v1038_v1  ;;  %v1298_v5 = vld [vmem:[%s1564_s30 + $0xd4] sm:$0xf0]  ;;  %v1281_v6 = vld [vmem:[%s1564_s30 + $0x54] sm:$0xf] }
  0x36   : > { %583 = vmatpush.bf16.msrb.mxu2 %v1059_v49  ;;  %v1040_v7 = vld [vmem:[%s1564_s30 + $0x58] sm:$0xf0]  ;;  %v1103_v8 = vor.u32 %v1298_v5, %v1102_v3  ;;  %v1297_v10 = vld [vmem:[%s1564_s30 + $0xd4] sm:$0xf]  ;;  %v1030_v13 = vld [vmem:[%s1564_s30 + $0x40] sm:$0xf] }
  0x37   : > { %596 = vmatpush.bf16.msrb.mxu3 %v1123_v52  ;;  %v1043_v9 = vor.u32 %v1281_v6, %v1040_v7  ;;  %v1104_v11 = vld [vmem:[%s1564_s30 + $0xd8] sm:$0xf0]  ;;  %v1280_v14 = vld [vmem:[%s1564_s30 + $0x44] sm:$0xf0]  ;;  %v1094_v15 = vld [vmem:[%s1564_s30 + $0xc0] sm:$0xf] }
  0x38   : > { %v1107_v12 = vor.u32 %v1297_v10, %v1104_v11  ;;  %v1031_v16 = vor.u32 %v1280_v14, %v1030_v13  ;;  %v1296_v17 = vld [vmem:[%s1564_s30 + $0xc4] sm:$0xf0]  ;;  %v1279_v18 = vld [vmem:[%s1564_s30 + $0x44] sm:$0xf]  ;;  %v1032_v19 = vld [vmem:[%s1564_s30 + $0x48] sm:$0xf0] }
  0x39   : > { %557 = vmatpush.bf16.msrb.mxu0 %v1055_v44  ;;  %570 = vmatpush.bf16.msrb.mxu1 %v1119_v48  ;;  %v1095_v20 = vor.u32 %v1296_v17, %v1094_v15  ;;  %v1035_v21 = vor.u32 %v1279_v18, %v1032_v19  ;;  %v1295_v22 = vld [vmem:[%s1564_s30 + $0xc4] sm:$0xf]  ;;  %v1096_v23 = vld [vmem:[%s1564_s30 + $0xc8] sm:$0xf0]  ;;  %v1022_v24 = vld [vmem:[%s1564_s30 + $0x30] sm:$0xf] }
  0x3a   : > { %584 = vmatpush.bf16.msrb.mxu2 %v1051_v61  ;;  %v1099_v25 = vor.u32 %v1295_v22, %v1096_v23  ;;  %v1278_v26 = vld [vmem:[%s1564_s30 + $0x34] sm:$0xf0]  ;;  %v1086_v27 = vld [vmem:[%s1564_s30 + $0xb0] sm:$0xf]  ;;  %v1277_v31 = vld [vmem:[%s1564_s30 + $0x34] sm:$0xf] }
  0x3b   : > { %597 = vmatpush.bf16.msrb.mxu3 %v1115_v0  ;;  %v1294_v28 = vld [vmem:[%s1564_s30 + $0xb4] sm:$0xf0]  ;;  %v328_v29 = vld [vmem:[%s1634_s9] ss:$8 sm:$0x3]  ;;  %v1023_v30 = vor.u32 %v1278_v26, %v1022_v24 }
  0x3c   : > { %v1024_v32 = vld [vmem:[%s1564_s30 + $0x38] sm:$0xf0]  ;;  %v1293_v33 = vld [vmem:[%s1564_s30 + $0xb4] sm:$0xf]  ;;  %v1087_v34 = vor.u32 %v1294_v28, %v1086_v27  ;;  %v1014_v36 = vld [vmem:[%s1564_s30 + $0x20] sm:$0xf] }
  0x3d   : > { %558 = vmatpush.bf16.msrb.mxu0 %v1047_v56  ;;  %571 = vmatpush.bf16.msrb.mxu1 %v1111_v60  ;;  %v1088_v35 = vld [vmem:[%s1564_s30 + $0xb8] sm:$0xf0]  ;;  %v1276_v37 = vld [vmem:[%s1564_s30 + $0x24] sm:$0xf0]  ;;  %v1027_v38 = vor.u32 %v1277_v31, %v1024_v32  ;;  %v1078_v40 = vld [vmem:[%s1564_s30 + $0xa0] sm:$0xf] }
  0x3e   : > { %585 = vmatpush.bf16.msrb.mxu2 %v1043_v9  ;;  %v1091_v39 = vor.u32 %v1293_v33, %v1088_v35  ;;  %v1292_v41 = vld [vmem:[%s1564_s30 + $0xa4] sm:$0xf0]  ;;  %v1275_v42 = vld [vmem:[%s1564_s30 + $0x24] sm:$0xf]  ;;  %v1016_v43 = vld [vmem:[%s1564_s30 + $0x28] sm:$0xf0]  ;;  %v1015_v48 = vor.u32 %v1276_v37, %v1014_v36 }
  0x3f   : > { %598 = vmatpush.bf16.msrb.mxu3 %v1107_v12  ;;  %v1291_v44 = vld [vmem:[%s1564_s30 + $0xa4] sm:$0xf]  ;;  %v1080_v45 = vld [vmem:[%s1564_s30 + $0xa8] sm:$0xf0]  ;;  %v330_v49 = vperm.slane %v328_v29, 0  ;;  %v1079_v50 = vor.u32 %v1292_v41, %v1078_v40  ;;  %v1019_v52 = vor.u32 %v1275_v42, %v1016_v43  ;;  %v331_v55 = vperm.slane %v328_v29, 1 }
  0x40   : > { %v1083_v53 = vor.u32 %v1291_v44, %v1080_v45  ;;  %v1321_v22 = vld [vmem:[%s1564_s30 + $0x194] sm:$0xf]  ;;  %v1201_v24 = vld [vmem:[%s1564_s30 + $0x198] sm:$0xf0]  ;;  %v1191_v26 = vld [vmem:[%s1564_s30 + $0x180] sm:$0xf] }
  0x41   : > { %559 = vmatpush.bf16.msrb.mxu0 %v1039_v4  ;;  %572 = vmatpush.bf16.msrb.mxu1 %v1103_v8  ;;  %v1320_v27 = vld [vmem:[%s1564_s30 + $0x184] sm:$0xf0]  ;;  %v1319_v29 = vld [vmem:[%s1564_s30 + $0x184] sm:$0xf]  ;;  %v1263_v32 = vld [vmem:[%s1564_s30 + $0x210] sm:$0xf] }
  0x42   : > { %586 = vmatpush.bf16.msrb.mxu2 %v1035_v21  ;;  %v1322_v21 = vld [vmem:[%s1564_s30 + $0x194] sm:$0xf0]  ;;  %v1192_v28 = vor.u32 %v1320_v27, %v1191_v26  ;;  %v1265_v36 = vld [vmem:[%s1564_s30 + $0x218] sm:$0xf0]  ;;  %v1317_v40 = vld [vmem:[%s1564_s30 + $0x174] sm:$0xf] }
  0x43   : > { %599 = vmatpush.bf16.msrb.mxu3 %v1099_v25  ;;  %v1204_v25 = vor.u32 %v1321_v22, %v1201_v24  ;;  %v1338_v33 = vld [vmem:[%s1564_s30 + $0x214] sm:$0xf0]  ;;  %v1185_v42 = vld [vmem:[%s1564_s30 + $0x178] sm:$0xf0]  ;;  %v1255_v44 = vld [vmem:[%s1564_s30 + $0x200] sm:$0xf] }
  0x44   : > { %v1264_v35 = vor.u32 %v1338_v33, %v1263_v32  ;;  %v1188_v43 = vor.u32 %v1317_v40, %v1185_v42  ;;  %v1336_v45 = vld [vmem:[%s1564_s30 + $0x204] sm:$0xf0]  ;;  %v1310_v24 = vld [vmem:[%s1564_s30 + $0x134] sm:$0xf0]  ;;  %v1327_v32 = vld [vmem:[%s1564_s30 + $0x1c4] sm:$0xf] }
  0x45   : > { %560 = vmatpush.bf16.msrb.mxu0 %v1031_v16  ;;  %573 = vmatpush.bf16.msrb.mxu1 %v1095_v20  ;;  %v1199_v20 = vld [vmem:[%s1564_s30 + $0x190] sm:$0xf] }
  0x46   : > { %587 = vmatpush.bf16.msrb.mxu2 %v1027_v38  ;;  %v1200_v23 = vor.u32 %v1322_v21, %v1199_v20  ;;  %v1183_v38 = vld [vmem:[%s1564_s30 + $0x170] sm:$0xf]  ;;  %v1233_v21 = vld [vmem:[%s1564_s30 + $0x1d8] sm:$0xf0] }
  0x47   : > { %600 = vmatpush.bf16.msrb.mxu3 %v1091_v39  ;;  %v1318_v39 = vld [vmem:[%s1564_s30 + $0x174] sm:$0xf0] }
  0x48   : > { %v1184_v41 = vor.u32 %v1318_v39, %v1183_v38  ;;  %v1307_v38 = vld [vmem:[%s1564_s30 + $0x124] sm:$0xf] }
  0x49   : > { %561 = vmatpush.bf16.msrb.mxu0 %v1023_v30  ;;  %574 = vmatpush.bf16.msrb.mxu1 %v1087_v34  ;;  %v1193_v30 = vld [vmem:[%s1564_s30 + $0x188] sm:$0xf0]  ;;  %v1337_v34 = vld [vmem:[%s1564_s30 + $0x214] sm:$0xf] }
  0x4a   : > { %588 = vmatpush.bf16.msrb.mxu2 %v1019_v52  ;;  %v1196_v31 = vor.u32 %v1319_v29, %v1193_v30  ;;  %v1268_v37 = vor.u32 %v1337_v34, %v1265_v36  ;;  %v1315_v52 = vld [vmem:[%s1564_s30 + $0x164] sm:$0xf]  ;;  %v1223_v30 = vld [vmem:[%s1564_s30 + $0x1c0] sm:$0xf]  ;;  %v1225_v34 = vld [vmem:[%s1564_s30 + $0x1c8] sm:$0xf0] }
  0x4b   : > { %601 = vmatpush.bf16.msrb.mxu3 %v1083_v53  ;;  %v1143_v36 = vld [vmem:[%s1564_s30 + $0x120] sm:$0xf] }
  0x4d   : > { %562 = vmatpush.bf16.msrb.mxu0 %v1015_v48  ;;  %575 = vmatpush.bf16.msrb.mxu1 %v1079_v50  ;;  %v1257_v48 = vld [vmem:[%s1564_s30 + $0x208] sm:$0xf0]  ;;  %v1175_v50 = vld [vmem:[%s1564_s30 + $0x160] sm:$0xf] }
  0x4e   : > { %852 = vmatpush.bf16.msra.mxu2 %v1204_v25  ;;  %v1309_v25 = vld [vmem:[%s1564_s30 + $0x134] sm:$0xf] }
  0x4f   : > { %865 = vmatpush.bf16.msra.mxu3 %v1268_v37  ;;  %v1308_v37 = vld [vmem:[%s1564_s30 + $0x124] sm:$0xf0] }
  0x50   : > { %v1144_v40 = vor.u32 %v1308_v37, %v1143_v36 }
  0x51   : > { %826 = vmatpush.bf16.msra.mxu0 %v1200_v23  ;;  %839 = vmatpush.bf16.msra.mxu1 %v1264_v35  ;;  %v1151_v23 = vld [vmem:[%s1564_s30 + $0x130] sm:$0xf]  ;;  %v1228_v35 = vor.u32 %v1327_v32, %v1225_v34 }
  0x52   : > { %853 = vmatpush.bf16.msra.mxu2 %v1196_v31  ;;  %v1152_v27 = vor.u32 %v1310_v24, %v1151_v23  ;;  %v1328_v31 = vld [vmem:[%s1564_s30 + $0x1c4] sm:$0xf0] }
  0x53   : > { %v1224_v33 = vor.u32 %v1328_v31, %v1223_v30  ;;  %v1140_v23 = vld [vmem:[%s1634_s9 + $0x2] ss:$8 sm:$0x3] }
  0x54   : > { %v663_v30 = vperm.slane %v1140_v23, 1 }
  0x55   : > { %827 = vmatpush.bf16.msra.mxu0 %v1192_v28  ;;  %v1153_v28 = vld [vmem:[%s1564_s30 + $0x138] sm:$0xf0] }
  0x56   : > { %854 = vmatpush.bf16.msra.mxu2 %v1188_v43  ;;  %v1156_v29 = vor.u32 %v1309_v25, %v1153_v28  ;;  %v662_v25 = vperm.slane %v1140_v23, 0 }
  0x59   : > { %828 = vmatpush.bf16.msra.mxu0 %v1184_v41  ;;  %v1145_v41 = vld [vmem:[%s1564_s30 + $0x128] sm:$0xf0] }
  0x5a   : > { %v1148_v43 = vor.u32 %v1307_v38, %v1145_v41 }
  0xad   : > { %v271_v46 = vpop.f32.mrf.mxu0  ;;  %v284_v47 = vpop.f32.mrf.mxu1 }
  0xaf   : > { %v311_v51 = vpop.f32.mrf.mxu2 }
  0xb0   : > { %v312_v54 = vadd.f32 %v311_v51, %v271_v46  ;;  %v1335_v46 = vld [vmem:[%s1564_s30 + $0x204] sm:$0xf]  ;;  %v1316_v51 = vld [vmem:[%s1564_s30 + $0x164] sm:$0xf0] }
  0xb1   : > { %v324_v56 = vpop.f32.mrf.mxu3  ;;  %v1176_v53 = vor.u32 %v1316_v51, %v1175_v50 }
  0xb2   : > { %v334_v57 = vadd.f32 %v330_v49, %v312_v54  ;;  %v325_v58 = vadd.f32 %v324_v56, %v284_v47  ;;  %v1256_v47 = vor.u32 %v1336_v45, %v1255_v44  ;;  %v1260_v49 = vor.u32 %v1335_v46, %v1257_v48  ;;  %v1177_v54 = vld [vmem:[%s1564_s30 + $0x168] sm:$0xf0]  ;;  %v1247_v56 = vld [vmem:[%s1564_s30 + $0x1f0] sm:$0xf]  ;;  %v1326_v45 = vld [vmem:[%s1564_s30 + $0x1b4] sm:$0xf0] }
  0xb3   : > { %829 = vmatpush.bf16.msra.mxu0 %v1176_v53  ;;  %v1215_v44 = vld [vmem:[%s1564_s30 + $0x1b0] sm:$0xf]  ;;  %v1325_v46 = vld [vmem:[%s1564_s30 + $0x1b4] sm:$0xf] }
  0xb4   : > { %v336_v59 = vmul.f32 1.442695, %v334_v57  ;;  %v335_v60 = vadd.f32 %v331_v55, %v325_v58  ;;  %840 = vmatpush.bf16.msra.mxu1 %v1256_v47  ;;  %866 = vmatpush.bf16.msra.mxu3 %v1260_v49  ;;  %v1180_v55 = vor.u32 %v1315_v52, %v1177_v54  ;;  %v1333_v58 = vld [vmem:[%s1564_s30 + $0x1f4] sm:$0xf]  ;;  %v1216_v48 = vor.u32 %v1326_v45, %v1215_v44  ;;  %v1217_v49 = vld [vmem:[%s1564_s30 + $0x1b8] sm:$0xf0] }
  0xb5   : > { %v273_v61 = vpop.f32.mrf.mxu0  ;;  %v286_v62 = vpop.f32.mrf.mxu1  ;;  %v1220_v52 = vor.u32 %v1325_v46, %v1217_v49  ;;  %v1207_v54 = vld [vmem:[%s1564_s30 + $0x1a0] sm:$0xf] }
  0xb6   : > { %1383 = vpow2.f32 %v336_v59  ;;  %v338_v63 = vmul.f32 1.442695, %v335_v60  ;;  %855 = vmatpush.bf16.msra.mxu2 %v1180_v55  ;;  %v1167_v62 = vld [vmem:[%s1564_s30 + $0x150] sm:$0xf]  ;;  %v1324_v55 = vld [vmem:[%s1564_s30 + $0x1a4] sm:$0xf0] }
  0xb7   : > { %v313_v0 = vpop.f32.mrf.mxu2 }
  0xb8   : > { %1385 = vpow2.f32 %v338_v63  ;;  %v1314_v63 = vld [vmem:[%s1564_s30 + $0x154] sm:$0xf0]  ;;  %v1313_v0 = vld [vmem:[%s1564_s30 + $0x154] sm:$0xf] }
  0xb9   : > { %v326_v1 = vpop.f32.mrf.mxu3 }
  0xba   : > { %v1168_v1 = vor.u32 %v1314_v63, %v1167_v62 }
  0xbc   : > { %v1384_v2 = vpop.eup %1383  ;;  %830 = vmatpush.bf16.msra.mxu0 %v1168_v1 }
  0xbd   : > { %v340_v3 = vadd.f32 1.0, %v1384_v2  ;;  %v1169_v2 = vld [vmem:[%s1564_s30 + $0x158] sm:$0xf0] }
  0xbe   : > { %v1386_v4 = vpop.eup %1385 }
  0xbf   : > { %v342_v5 = vmul.f32 %v340_v3, %v340_v3  ;;  %v341_v6 = vadd.f32 1.0, %v1386_v4  ;;  %v1172_v3 = vor.u32 %v1313_v0, %v1169_v2  ;;  %v1239_v4 = vld [vmem:[%s1564_s30 + $0x1e0] sm:$0xf] }
  0xc1   : > { %v344_v7 = vadd.f32 1.0, %v342_v5  ;;  %v343_v8 = vmul.f32 %v341_v6, %v341_v6  ;;  %v1332_v5 = vld [vmem:[%s1564_s30 + $0x1e4] sm:$0xf0]  ;;  %v1331_v6 = vld [vmem:[%s1564_s30 + $0x1e4] sm:$0xf]  ;;  %856 = vmatpush.bf16.msra.mxu2 %v1172_v3 }
  0xc3   : > { %1387 = vrcp.f32 %v344_v7  ;;  %v345_v9 = vadd.f32 1.0, %v343_v8  ;;  %v1240_v7 = vor.u32 %v1332_v5, %v1239_v4  ;;  %v1241_v8 = vld [vmem:[%s1564_s30 + $0x1e8] sm:$0xf0] }
  0xc5   : > { %1389 = vrcp.f32 %v345_v9  ;;  %v1244_v9 = vor.u32 %v1331_v6, %v1241_v8 }
  0xc9   : > { %v1388_v10 = vpop.eup %1387 }
  0xca   : > { %v348_v11 = vmul.f32 2.0, %v1388_v10  ;;  %v1159_v10 = vld [vmem:[%s1564_s30 + $0x140] sm:$0xf] }
  0xcb   : > { %v1390_v12 = vpop.eup %1389 }
  0xcc   : > { %v350_v13 = vsub.f32 1.0, %v348_v11  ;;  %v349_v14 = vmul.f32 2.0, %v1390_v12  ;;  %v1312_v11 = vld [vmem:[%s1564_s30 + $0x144] sm:$0xf0]  ;;  %v1311_v12 = vld [vmem:[%s1564_s30 + $0x144] sm:$0xf] }
  0xce   : > { %v352_v15 = vmul.f32 %v350_v13, %v334_v57  ;;  %v351_v16 = vsub.f32 1.0, %v349_v14  ;;  %v1334_v57 = vld [vmem:[%s1564_s30 + $0x1f4] sm:$0xf0]  ;;  %v1698_v13 = vld [vmem:[%s1634_s9 + $0x1] ss:$8 sm:$0x3]  ;;  %v1160_v14 = vor.u32 %v1312_v11, %v1159_v10 }
  0xcf   : > { %v1248_v59 = vor.u32 %v1334_v57, %v1247_v56  ;;  %v391_v26 = vperm.slane %v1698_v13, 0  ;;  %v392_v51 = vperm.slane %v1698_v13, 1  ;;  %v1208_v57 = vor.u32 %v1324_v55, %v1207_v54 }
  0xd0   : > { %v354_v17 = vpack.c.bf16 %v352_v15, %v352_v15  ;;  %v353_v18 = vmul.f32 %v351_v16, %v335_v60  ;;  %v1249_v60 = vld [vmem:[%s1564_s30 + $0x1f8] sm:$0xf0]  ;;  %v1161_v15 = vld [vmem:[%s1564_s30 + $0x148] sm:$0xf0]  ;;  %831 = vmatpush.bf16.msra.mxu0 %v1160_v14 }
  0xd1   : > { %v1252_v61 = vor.u32 %v1333_v58, %v1249_v60  ;;  %841 = vmatpush.bf16.msra.mxu1 %v1248_v59  ;;  %v1164_v16 = vor.u32 %v1311_v12, %v1161_v15  ;;  %v1323_v58 = vld [vmem:[%s1564_s30 + $0x1a4] sm:$0xf]  ;;  %v1209_v59 = vld [vmem:[%s1564_s30 + $0x1a8] sm:$0xf0] }
  0xd2   : > { %563 = vmatmul.bf16.vlgmr.msrb.gmra.mxu0 %v354_v17  ;;  %v355_v19 = vpack.c.bf16 %v353_v18, %v353_v18  ;;  %589 = vmatmul.bf16.vlgmr.msrb.gmra.mxu2 %v354_v17  ;;  %v1231_v17 = vld [vmem:[%s1564_s30 + $0x1d0] sm:$0xf]  ;;  %v1330_v18 = vld [vmem:[%s1564_s30 + $0x1d4] sm:$0xf0] }
  0xd3   : > { %867 = vmatpush.bf16.msra.mxu3 %v1252_v61  ;;  %v1232_v20 = vor.u32 %v1330_v18, %v1231_v17  ;;  %857 = vmatpush.bf16.msra.mxu2 %v1164_v16  ;;  %v1212_v61 = vor.u32 %v1323_v58, %v1209_v59 }
  0xd4   : > { %576 = vmatmul.bf16.vlgmr.msrb.gmra.mxu1 %v355_v19  ;;  %602 = vmatmul.bf16.vlgmr.msrb.gmra.mxu3 %v355_v19  ;;  %v1329_v19 = vld [vmem:[%s1564_s30 + $0x1d4] sm:$0xf] }
  0xd5   : > { %842 = vmatpush.bf16.msra.mxu1 %v1240_v7  ;;  %v1236_v22 = vor.u32 %v1329_v19, %v1233_v21  ;;  %832 = vmatpush.bf16.msra.mxu0 %v1152_v27 }
  0xd7   : > { %868 = vmatpush.bf16.msra.mxu3 %v1244_v9  ;;  %858 = vmatpush.bf16.msra.mxu2 %v1156_v29 }
  0xd9   : > { %843 = vmatpush.bf16.msra.mxu1 %v1232_v20  ;;  %833 = vmatpush.bf16.msra.mxu0 %v1144_v40 }
  0xdb   : > { %869 = vmatpush.bf16.msra.mxu3 %v1236_v22  ;;  %859 = vmatpush.bf16.msra.mxu2 %v1148_v43 }
  0xdd   : > { %844 = vmatpush.bf16.msra.mxu1 %v1224_v33 }
  0xdf   : > { %870 = vmatpush.bf16.msra.mxu3 %v1228_v35 }
  0xe1   : > { %845 = vmatpush.bf16.msra.mxu1 %v1216_v48 }
  0xe3   : > { %871 = vmatpush.bf16.msra.mxu3 %v1220_v52  ;;  %v1269_v52 = vld [vmem:[%s1634_s9 + $0x3] ss:$8 sm:$0x3] }
  0xe5   : > { %846 = vmatpush.bf16.msra.mxu1 %v1208_v57  ;;  %v901_v57 = vperm.slane %v1269_v52, 1 }
  0xe7   : > { %872 = vmatpush.bf16.msra.mxu3 %v1212_v61 }
 0x14f   : > { %v564_v39 = vpop.f32.mrf.mxu0 }
 0x150   : > { %v565_v42 = vadd.f32 %v564_v39, %v391_v26 }
 0x151   : > { %v577_v47 = vpop.f32.mrf.mxu1 }
 0x152   : > { %v578_v50 = vadd.f32 %v577_v47, %v565_v42 }
 0x154   : > { %v607_v53 = vmul.f32 1.442695, %v578_v50 }
 0x155   : > { %v590_v56 = vpop.f32.mrf.mxu2 }
 0x156   : > { %1391 = vpow2.f32 %v607_v53  ;;  %v591_v60 = vadd.f32 %v590_v56, %v392_v51  ;;  %v900_v56 = vperm.slane %v1269_v52, 0 }
 0x157   : > { %v603_v62 = vpop.f32.mrf.mxu3  ;;  %v566_v63 = vpop.f32.mrf.mxu0 }
 0x158   : > { %v604_v0 = vadd.f32 %v603_v62, %v591_v60  ;;  %v898_v62 = vld [vmem:[%s1634_s9 + $0x4] ss:$0 sm:$0xff] }
 0x159   : > { %v579_v1 = vpop.f32.mrf.mxu1 }
 0x15a   : > { %v609_v2 = vmul.f32 1.442695, %v604_v0 }
 0x15c   : > { %v1392_v3 = vpop.eup %1391  ;;  %1393 = vpow2.f32 %v609_v2 }
 0x15d   : > { %v611_v4 = vadd.f32 1.0, %v1392_v3  ;;  %v592_v5 = vpop.f32.mrf.mxu2 }
 0x15f   : > { %v613_v6 = vmul.f32 %v611_v4, %v611_v4  ;;  %v605_v7 = vpop.f32.mrf.mxu3 }
 0x161   : > { %v615_v8 = vadd.f32 1.0, %v613_v6 }
 0x162   : > { %v1394_v9 = vpop.eup %1393 }
 0x163   : > { %1395 = vrcp.f32 %v615_v8  ;;  %v612_v10 = vadd.f32 1.0, %v1394_v9 }
 0x165   : > { %v614_v11 = vmul.f32 %v612_v10, %v612_v10 }
 0x167   : > { %v616_v12 = vadd.f32 1.0, %v614_v11 }
 0x169   : > { %v1396_v13 = vpop.eup %1395  ;;  %1397 = vrcp.f32 %v616_v12 }
 0x16a   : > { %v619_v14 = vmul.f32 2.0, %v1396_v13 }
 0x16c   : > { %v621_v15 = vsub.f32 1.0, %v619_v14 }
 0x16e   : > { %v623_v16 = vmul.f32 %v621_v15, %v578_v50 }
 0x16f   : > { %v1398_v17 = vpop.eup %1397 }
 0x170   : > { %v625_v18 = vpack.c.bf16 %v623_v16, %v623_v16  ;;  %v620_v19 = vmul.f32 2.0, %v1398_v17 }
 0x172   : > { %v622_v20 = vsub.f32 1.0, %v620_v19  ;;  %834 = vmatmul.bf16.vlgmr.msra.gmra.mxu0 %v625_v18  ;;  %860 = vmatmul.bf16.vlgmr.msra.gmra.mxu2 %v625_v18 }
 0x174   : > { %v624_v21 = vmul.f32 %v622_v20, %v604_v0 }
 0x176   : > { %v626_v22 = vpack.c.bf16 %v624_v21, %v624_v21 }
 0x178   : > { %847 = vmatmul.bf16.vlgmr.msra.gmra.mxu1 %v626_v22  ;;  %873 = vmatmul.bf16.vlgmr.msra.gmra.mxu3 %v626_v22 }
 0x1ef   : > { %v835_v24 = vpop.f32.mrf.mxu0 }
 0x1f0   : > { %v836_v26 = vadd.f32 %v835_v24, %v662_v25 }
 0x1f5   : > { %v848_v27 = vpop.f32.mrf.mxu1  ;;  %v861_v28 = vpop.f32.mrf.mxu2 }
 0x1f6   : > { %v849_v29 = vadd.f32 %v848_v27, %v836_v26  ;;  %v862_v33 = vadd.f32 %v861_v28, %v663_v30 }
 0x1f7   : > { %v837_v31 = vpop.f32.mrf.mxu0 }
 0x1f8   : > { %v878_v32 = vmul.f32 1.442695, %v849_v29 }
 0x1fa   : > { %1399 = vpow2.f32 %v878_v32 }
 0x1fb   : > { %v874_v34 = vpop.f32.mrf.mxu3 }
 0x1fc   : > { %v875_v35 = vadd.f32 %v874_v34, %v862_v33 }
 0x1fd   : > { %v850_v36 = vpop.f32.mrf.mxu1  ;;  %v863_v37 = vpop.f32.mrf.mxu2 }
 0x1fe   : > { %v880_v38 = vmul.f32 1.442695, %v875_v35 }
 0x200   : > { %v1400_v39 = vpop.eup %1399  ;;  %1401 = vpow2.f32 %v880_v38 }
 0x201   : > { %v882_v40 = vadd.f32 1.0, %v1400_v39 }
 0x203   : > { %v884_v41 = vmul.f32 %v882_v40, %v882_v40  ;;  %v876_v42 = vpop.f32.mrf.mxu3 }
 0x205   : > { %v886_v43 = vadd.f32 1.0, %v884_v41 }
 0x206   : > { %v1402_v44 = vpop.eup %1401 }
 0x207   : > { %1403 = vrcp.f32 %v886_v43  ;;  %v883_v45 = vadd.f32 1.0, %v1402_v44 }
 0x209   : > { %v885_v46 = vmul.f32 %v883_v45, %v883_v45 }
 0x20b   : > { %v887_v47 = vadd.f32 1.0, %v885_v46 }
 0x20d   : > { %v1404_v48 = vpop.eup %1403  ;;  %1405 = vrcp.f32 %v887_v47 }
 0x20e   : > { %v890_v49 = vmul.f32 2.0, %v1404_v48 }
 0x210   : > { %v892_v50 = vsub.f32 1.0, %v890_v49 }
 0x212   : > { %v894_v54 = vmul.f32 %v892_v50, %v849_v29 }
 0x213   : > { %v1406_v51 = vpop.eup %1405 }
 0x214   : > { %v891_v53 = vmul.f32 2.0, %v1406_v51  ;;  %v904_v59 = vmul.f32 %v900_v56, %v894_v54 }
 0x216   : > { %v893_v55 = vsub.f32 1.0, %v891_v53 }
 0x218   : > { %v895_v58 = vmul.f32 %v893_v55, %v875_v35 }
 0x21a   : > { %v905_v60 = vmul.f32 %v901_v57, %v895_v58 }
 0x21c   : > { %v906_v61 = vadd.f32 %v905_v60, %v904_v59 }
 0x21e   : > { %907 = vadd.xlane.f32.xlu0 %v906_v61 }
 0x291   : > { %v908_v63 = vpop.xlane.xlu0 %907 }
 0x292   : > { %v909_v0 = vadd.f32 %v908_v63, %v898_v62 }
 0x294   : > { %v910_v1 = vmax.f32 %v909_v0, 0.0 }
 0x296   : > { %v911_v2 = vmin.f32 %v910_v1, 1.0 }
 0x298   : > { %913 = vst.msk [vmem:[%s237_s13] sm:$0xff] %vm912_vm3, %v911_v2 }
 0x299 PF: > { %p14_p7 = scmp.ge.s32.totalorder %s1522_s20, 4   ;;  %s1754_s15 = smov %s1463_s16 }
 0x29a   : > { %s1755_s16 = smov %s1467_s17  ;;  %s1756_s17 = smov %s1532_s23 }
 0x29b   : > { %s1757_s18 = smov %s1522_s20  ;;  %16 = sbr.rel (!%p14_p7) target bundleno = 3 (0x3), region = 82 }
 0x2a0   :  { %933 = vsyncpa [#allocation3], 1 }
 0x2a1   :  { %935 = vsyncpa [#allocation3 + $0x1], 1 }

</bundles_post_ra>
